<compile_context>
chip_gen: v6e
topology: v6e:2x2x1
jax: 0.10.0
libtpu: 0.0.40
codegen_flags: <defaults>
</compile_context>

<pallas_src>
import functools
import jax
import jax.numpy as jnp
from jax.experimental import pallas as pl
from jax.experimental.pallas import tpu as pltpu


# --------------------------------------------------------------------------
# Kernel 1: qkv = (x @ Wqkv^T + b) * policy     (policy applied per token row)
#           grid tiled over M = N*B; weight stays resident in VMEM.
# --------------------------------------------------------------------------
def _qkv_kernel(x_ref, w_ref, b_ref, pol_ref, o_ref):
    # x: (tm, C) bf16   w: (C, 3C) bf16   b: (1, 3C) f32   pol: (tm, 1) f32
    out = jnp.dot(x_ref[...], w_ref[...], preferred_element_type=jnp.float32)
    out = (out + b_ref[...]) * pol_ref[...]
    o_ref[...] = out.astype(o_ref.dtype)


def qkv_projection(x_flat_bf16, w_t_bf16, bias_f32, pol_flat_f32, tm):
    M, C = x_flat_bf16.shape
    C3 = w_t_bf16.shape[1]
    return pl.pallas_call(
        _qkv_kernel,
        out_shape=jax.ShapeDtypeStruct((M, C3), jnp.bfloat16),
        grid=(pl.cdiv(M, tm),),
        in_specs=[
            pl.BlockSpec((tm, C), lambda i: (i, 0)),
            pl.BlockSpec((C, C3), lambda i: (0, 0)),   # weight resident across M tiles
            pl.BlockSpec((1, C3), lambda i: (0, 0)),
            pl.BlockSpec((tm, 1), lambda i: (i, 0)),
        ],
        out_specs=pl.BlockSpec((tm, C3), lambda i: (i, 0)),
        compiler_params=pltpu.CompilerParams(dimension_semantics=("parallel",)),
    )(x_flat_bf16, w_t_bf16, bias_f32, pol_flat_f32)


# --------------------------------------------------------------------------
# Kernel 2: attn = softmax_with_policy(q @ k^T, policy)   per batch b, all heads
#           (qk scale is pre-folded into the q weights). Also emits the
#           head-summed first attention row (significance numerator).
# --------------------------------------------------------------------------
def _attn_policy_kernel(q_ref, k_ref, pol_ref, attn_ref, sig_ref, *, eps, num_heads):
    pol = pol_ref[0]                                   # (1, N) f32
    n = pol.shape[-1]
    # attn_policy is head-independent: build it once per batch.
    eye = (jax.lax.broadcasted_iota(jnp.int32, (n, n), 0)
           == jax.lax.broadcasted_iota(jnp.int32, (n, n), 1)).astype(jnp.float32)
    attn_policy = pol + (1.0 - pol) * eye              # (N, N)

    sig = jnp.zeros((1, n), dtype=jnp.float32)
    for h in range(num_heads):                         # static unroll over heads
        q = q_ref[0, h]                                # (N, hd) bf16 (scale folded in)
        k = k_ref[0, h]                                # (N, hd) bf16
        s = jax.lax.dot_general(q, k, (((1,), (1,)), ((), ())),
                                preferred_element_type=jnp.float32)       # (N, N) f32
        m = jnp.max(s, axis=-1, keepdims=True)
        e = jnp.exp(s - m) * attn_policy
        denom = jnp.sum(e, axis=-1, keepdims=True) + eps
        a = (e + eps / n) * pl.reciprocal(denom, approx=True)
        attn_ref[0, h] = a
        sig = sig + a[0:1, :]
    sig_ref[0] = sig


def attention_with_policy(q, k, policy_b1n, eps=1e-6):
    B, H, N, hd = q.shape
    kernel = functools.partial(_attn_policy_kernel, eps=eps, num_heads=H)
    return pl.pallas_call(
        kernel,
        out_shape=(jax.ShapeDtypeStruct((B, H, N, N), jnp.float32),
                   jax.ShapeDtypeStruct((B, 1, N), jnp.float32)),
        grid=(B,),
        in_specs=[
            pl.BlockSpec((1, H, N, hd), lambda b: (b, 0, 0, 0)),
            pl.BlockSpec((1, H, N, hd), lambda b: (b, 0, 0, 0)),
            pl.BlockSpec((1, 1, N), lambda b: (b, 0, 0)),
        ],
        out_specs=(
            pl.BlockSpec((1, H, N, N), lambda b: (b, 0, 0, 0)),
            pl.BlockSpec((1, 1, N), lambda b: (b, 0, 0)),
        ),
        compiler_params=pltpu.CompilerParams(dimension_semantics=("parallel",)),
    )(q, k, policy_b1n)


# --------------------------------------------------------------------------
# Kernel 3: per batch b: merge heads of (attn @ v) into a (T, C) scratch, then a
#           single (T,C)x(C,C) output projection + bias, masked by policy.
# --------------------------------------------------------------------------
def _attn_v_project_kernel(attn_ref, v_ref, wpt_ref, bp_ref, pol_ref, o_ref, xh_ref,
                           *, num_heads, head_dim):
    # per-head attn @ v written into the merged (T, H*hd) f32 scratch
    for h in range(num_heads):
        a = attn_ref[0, h]            # (T, N) bf16
        vh = v_ref[0, h]              # (N, hd) bf16
        xh_ref[:, h * head_dim:(h + 1) * head_dim] = jnp.dot(
            a, vh, preferred_element_type=jnp.float32)
    # one K=C contraction on the MXU instead of H shallow (hd) contractions
    out = jnp.dot(xh_ref[...].astype(jnp.bfloat16), wpt_ref[...],
                  preferred_element_type=jnp.float32)
    out = (out + bp_ref[...]) * pol_ref[0]
    o_ref[0] = out.astype(o_ref.dtype)


def attn_v_project(attn_new, v, w_proj, b_proj, policy_new):
    B, H, T, N = attn_new.shape
    hd = v.shape[-1]
    C = H * hd
    wpt = jnp.asarray(w_proj).T.astype(jnp.bfloat16)          # (C, C)
    bp = jnp.asarray(b_proj).reshape(1, C).astype(jnp.float32)
    kernel = functools.partial(_attn_v_project_kernel, num_heads=H, head_dim=hd)
    return pl.pallas_call(
        kernel,
        out_shape=jax.ShapeDtypeStruct((B, T, C), jnp.float32),
        grid=(B,),
        in_specs=[
            pl.BlockSpec((1, H, T, N), lambda b: (b, 0, 0, 0)),
            pl.BlockSpec((1, H, N, hd), lambda b: (b, 0, 0, 0)),
            pl.BlockSpec((C, C), lambda b: (0, 0)),           # resident
            pl.BlockSpec((1, C), lambda b: (0, 0)),
            pl.BlockSpec((1, T, 1), lambda b: (b, 0, 0)),
        ],
        out_specs=pl.BlockSpec((1, T, C), lambda b: (b, 0, 0)),
        scratch_shapes=[pltpu.VMEM((T, C), jnp.float32)],
        compiler_params=pltpu.CompilerParams(dimension_semantics=("parallel",)),
    )(attn_new.astype(jnp.bfloat16), v, wpt, bp, policy_new)


# --------------------------------------------------------------------------
# Plain-JAX glue for the token-sampling index logic (sort / cumsum / gather)
# — kept in f32 (cumsum / argmin are sensitive to bf16 rounding).
# --------------------------------------------------------------------------
def get_unique_indices(indices, max_value):
    sorted_indices = jnp.sort(indices, axis=1)
    shift_left = jnp.pad(sorted_indices[:, 1:], ((0, 0), (0, 1)), constant_values=1)
    unique = jnp.where(shift_left - sorted_indices == 0,
                       max_value * jnp.ones_like(indices), sorted_indices)
    return jnp.sort(unique, axis=1)


def create_ys(normalized_cdf, n_tokens):
    B = normalized_cdf.shape[0]
    ys = jnp.broadcast_to(jnp.linspace(0.0, 1.0, n_tokens - 1)[None, :],
                          (B, n_tokens - 1))
    ys_start = jnp.min(
        normalized_cdf + (normalized_cdf == 0).astype(jnp.float32) * 1e8, axis=1
    )[:, None]
    steps = jnp.arange(0, n_tokens - 1, dtype=jnp.float32)[None, :]
    ys = ys_start + (ys * (n_tokens - 2) - ys_start * steps) / (n_tokens - 2)
    return ys


def adaptive_token_sampler_forward(params, x, policy, n_tokens, raw_x,
                                   n_ref_tokens, num_heads):
    N, B, C = x.shape
    H = num_heads
    hd = C // H
    scale = hd ** (-0.5)

    # static n_tokens adjustment (mirrors the PyTorch forward)
    if n_tokens > N:
        n_tokens = N
    if n_tokens <= 1.0:
        n_tokens = n_tokens * N
    if n_tokens < 8:
        n_tokens = 8
    if N < n_tokens:
        n_tokens = N
    T = int(n_tokens)

    # Fold the qk scale into the q-slice of W_qkv / b_qkv (mathematically identical
    # to scaling the logits; in a real model this is a one-time param transform).
    scale_vec = jnp.concatenate([jnp.full((C,), scale, jnp.float32),
                                 jnp.ones((2 * C,), jnp.float32)])
    w_eff = params['w_qkv'].astype(jnp.float32) * scale_vec[:, None]     # (3C, C)
    b_eff = params['b_qkv'].astype(jnp.float32) * scale_vec              # (3C,)

    # ---- QKV projection + policy scaling (Pallas kernel 1, M-tiled, bf16 MXU) ----
    M = N * B
    tm = M if M <= 512 else 512
    x_flat = x.reshape(M, C).astype(jnp.bfloat16)
    pol_flat = jnp.transpose(policy, (1, 0, 2)).reshape(M, 1).astype(jnp.float32)
    qkv = qkv_projection(x_flat, w_eff.T.astype(jnp.bfloat16),
                         b_eff.reshape(1, 3 * C), pol_flat, tm)          # (M, 3C) bf16

    qkv = jnp.transpose(qkv.reshape(N, B, 3, H, hd), (2, 1, 3, 0, 4))    # (3,B,H,N,hd)
    q, k, v = qkv[0], qkv[1], qkv[2]                                     # bf16

    # ---- attention with policy softmax, heads batched per b (Pallas kernel 2) ----
    pol_b1n = policy[:, :, 0].reshape(B, 1, N).astype(jnp.float32)
    attn, sig_row = attention_with_policy(q, k, pol_b1n)   # (B,H,N,N) f32, (B,1,N) f32

    # ---- score assignment step (tiny, f32 JAX glue) ----
    v_norm = jnp.sqrt(jnp.sum(jnp.square(v.astype(jnp.float32)), axis=(1, 3)))  # (B,N)
    significance = sig_row[:, 0, :] * v_norm                                    # (B,N)
    significance = significance[:, 1:]
    significance = significance / jnp.sum(significance, axis=1, keepdims=True)
    sorted_indices = jnp.argsort(significance, axis=1)
    sorted_scores = jnp.take_along_axis(significance, sorted_indices, axis=1)

    # ---- inverse transform sampling ----
    raw_x_b = jnp.transpose(raw_x, (1, 0, 2)).astype(jnp.float32)        # (B, N, C)
    cdf = jnp.cumsum(sorted_scores, axis=1)
    cmin = jnp.min(cdf, axis=1, keepdims=True)
    cmax = jnp.max(cdf, axis=1, keepdims=True)
    normalized_cdf = (cdf - cmin) / (cmax - cmin)

    ys = create_ys(normalized_cdf, n_ref_tokens)[:, :, None]             # (B, R, 1)
    R = ys.shape[1]
    diff_tokens = R - (N - 1)
    assert diff_tokens >= 0, "n_ref_tokens must be >= N in this implementation"
    padded_cdf = jnp.pad(normalized_cdf[:, None, :],
                         ((0, 0), (0, 0), (diff_tokens, 0)))
    tokens_to_pick_ind = jnp.argmin(jnp.abs(ys - padded_cdf), axis=2) - diff_tokens

    # TODO(synk): at production N, gather the T selected attn rows directly inside
    # kernel 3 via PrefetchScalarGridSpec (scalar-prefetch indices) to avoid
    # materializing attn_new in HBM; kept in JAX glue here for exact reference
    # semantics.
    attn_sorted = jnp.take_along_axis(
        attn[:, :, 1:, :],
        jnp.broadcast_to(sorted_indices[:, None, :, None], (B, H, N - 1, N)), axis=2)
    attn_tmp = jnp.pad(attn_sorted, ((0, 0), (0, 0), (0, 1), (0, 0)))
    raw_x_sorted = jnp.take_along_axis(
        raw_x_b[:, 1:, :],
        jnp.broadcast_to(sorted_indices[:, :, None], (B, N - 1, C)), axis=1)
    raw_x_tmp = jnp.pad(raw_x_sorted, ((0, 0), (0, 1), (0, 0)))

    unique_indices = get_unique_indices(tokens_to_pick_ind, N - 1)[:, :N - 1]
    attn_tmp = jnp.take_along_axis(
        attn_tmp,
        jnp.broadcast_to(unique_indices[:, None, :, None], (B, H, T - 1, N)), axis=2)
    raw_x_tmp = jnp.take_along_axis(
        raw_x_tmp,
        jnp.broadcast_to(unique_indices[:, :, None], (B, T - 1, C)), axis=1)

    attn_new = jnp.concatenate([attn[:, :, 0:1, :], attn_tmp], axis=2)     # (B,H,T,N)
    selected_x = jnp.concatenate([raw_x_b[:, 0:1, :], raw_x_tmp], axis=1)  # (B,T,C)
    policy_new = (unique_indices != N - 1)[:, :, None].astype(jnp.float32)
    policy_new = jnp.pad(policy_new, ((0, 0), (1, 0), (0, 0)), constant_values=1.0)

    # ---- attn @ v + output projection + policy mask (Pallas kernel 3) ----
    x_out = attn_v_project(attn_new, v, params['w_proj'], params['b_proj'],
                           policy_new)                                      # (B,T,C)

    # Device-side fixed-size nonzero (no host sync); unused slots filled with -1.
    # TODO(synk): torch.nonzero has a data-dependent shape; drop_tokens=True branch
    # (dynamic-size scatter) is not implemented.
    sampler = jnp.argwhere(policy_new != 0, size=B * T, fill_value=-1)

    return x_out, selected_x, policy_new, sampler


if __name__ == "__main__":
    key = jax.random.PRNGKey(0)
    kx, kraw, kw1, kb1, kw2, kb2 = jax.random.split(key, 6)

    N, B, C, H = 16, 2, 64, 4          # tokens, batch, dim, heads (head_dim = 16)
    n_tokens = 16.0
    n_ref_tokens = 16

    x = jax.random.normal(kx, (N, B, C), dtype=jnp.float32)
    raw_x = jax.random.normal(kraw, (N, B, C), dtype=jnp.float32)
    policy = jnp.ones((B, N, 1), dtype=jnp.float32)

    params = {
        'w_qkv': 0.02 * jax.random.normal(kw1, (3 * C, C), dtype=jnp.float32),
        'b_qkv': 0.01 * jax.random.normal(kb1, (3 * C,), dtype=jnp.float32),
        'w_proj': 0.02 * jax.random.normal(kw2, (C, C), dtype=jnp.float32),
        'b_proj': 0.01 * jax.random.normal(kb2, (C,), dtype=jnp.float32),
        # out_zero_mask parameter from __init__ (unused: drop_tokens=False)
        'out_zero_mask': jnp.zeros((1, C), dtype=jnp.float16),
    }

    x_out, selected_x, policy_new, sampler = adaptive_token_sampler_forward(
        params, x, policy, n_tokens, raw_x, n_ref_tokens, num_heads=H)
    jax.block_until_ready((x_out, selected_x, policy_new, sampler))
    assert x_out.shape == (B, 16, C)
    assert selected_x.shape == (B, 16, C)
    assert policy_new.shape == (B, 16, 1)
    assert sampler.shape == (B * 16, 3)
    print("KERNEL_OK")
</pallas_src>

<mosaic_0001>
module attributes {stable_mosaic.version = 11 : i64} {
  func.func @_qkv_kernel(%arg0: i32, %arg1: memref<32x64xbf16, #tpu.memory_space<vmem>>, %arg2: memref<64x192xbf16, #tpu.memory_space<vmem>>, %arg3: memref<1x192xf32, #tpu.memory_space<vmem>>, %arg4: memref<32x1xf32, #tpu.memory_space<vmem>>, %arg5: memref<32x192xbf16, #tpu.memory_space<vmem>>) attributes {dimension_semantics = [#tpu.dimension_semantics<parallel>], iteration_bounds = array<i64: 1>, scalar_prefetch = 0 : i64, scratch_operands = 0 : i64, tpu.core_type = #tpu.core_type<tc>, window_params = [{transform_indices = @transform_0, window_bounds = array<i64: 32, 64>}, {pipeline_mode = #tpu.pipeline_mode<synchronous>, transform_indices = @transform_1, window_bounds = array<i64: 64, 192>}, {pipeline_mode = #tpu.pipeline_mode<synchronous>, transform_indices = @transform_2, window_bounds = array<i64: 1, 192>}, {transform_indices = @transform_3, window_bounds = array<i64: 32, 1>}, {transform_indices = @transform_4, window_bounds = array<i64: 32, 192>}]} {
    %c0 = arith.constant 0 : index
    %c0_0 = arith.constant 0 : index
    %0 = vector.load %arg1[%c0, %c0_0] : memref<32x64xbf16, #tpu.memory_space<vmem>>, vector<32x64xbf16>
    %c0_1 = arith.constant 0 : index
    %c0_2 = arith.constant 0 : index
    %1 = vector.load %arg2[%c0_1, %c0_2] : memref<64x192xbf16, #tpu.memory_space<vmem>>, vector<64x192xbf16>
    %cst = arith.constant dense<0.000000e+00> : vector<32x192xf32>
    %2 = tpu.matmul %0, %1, %cst {dimension_numbers = #tpu.dot_dimension_numbers<[1], [0], [0], [1], [0, 0, 1, 1], [], []>} : vector<32x64xbf16>, vector<64x192xbf16>, vector<32x192xf32> -> vector<32x192xf32>
    %c0_3 = arith.constant 0 : index
    %c0_4 = arith.constant 0 : index
    %3 = vector.load %arg3[%c0_3, %c0_4] : memref<1x192xf32, #tpu.memory_space<vmem>>, vector<1x192xf32>
    %4 = vector.broadcast %3 : vector<1x192xf32> to vector<32x192xf32>
    %5 = arith.addf %2, %4 : vector<32x192xf32>
    %c0_5 = arith.constant 0 : index
    %c0_6 = arith.constant 0 : index
    %6 = vector.load %arg4[%c0_5, %c0_6] : memref<32x1xf32, #tpu.memory_space<vmem>>, vector<32x1xf32>
    %7 = vector.broadcast %6 : vector<32x1xf32> to vector<32x192xf32>
    %8 = arith.mulf %5, %7 : vector<32x192xf32>
    %9 = arith.truncf %8 : vector<32x192xf32> to vector<32x192xbf16>
    %c0_7 = arith.constant 0 : index
    %c0_8 = arith.constant 0 : index
    %10 = vector.load %arg5[%c0_7, %c0_8] : memref<32x192xbf16, #tpu.memory_space<vmem>>, vector<32x192xbf16>
    tpu.vector_store %arg5[%c0_7, %c0_8], %9 {strides = array<i32>} : memref<32x192xbf16, #tpu.memory_space<vmem>>, vector<32x192xbf16>,
    return
  }
  func.func @transform_0(%arg0: i32) -> (i32, i32) {
    %c0_i32 = arith.constant 0 : i32
    %c0_i32_0 = arith.constant 0 : i32
    return %arg0, %c0_i32 : i32, i32
  }
  func.func @transform_1(%arg0: i32) -> (i32, i32) {
    %c0_i32 = arith.constant 0 : i32
    %c0_i32_0 = arith.constant 0 : i32
    %c0_i32_1 = arith.constant 0 : i32
    return %c0_i32, %c0_i32_0 : i32, i32
  }
  func.func @transform_2(%arg0: i32) -> (i32, i32) {
    %c0_i32 = arith.constant 0 : i32
    %c0_i32_0 = arith.constant 0 : i32
    %c0_i32_1 = arith.constant 0 : i32
    return %c0_i32, %c0_i32_0 : i32, i32
  }
  func.func @transform_3(%arg0: i32) -> (i32, i32) {
    %c0_i32 = arith.constant 0 : i32
    %c0_i32_0 = arith.constant 0 : i32
    return %arg0, %c0_i32 : i32, i32
  }
  func.func @transform_4(%arg0: i32) -> (i32, i32) {
    %c0_i32 = arith.constant 0 : i32
    %c0_i32_0 = arith.constant 0 : i32
    return %arg0, %c0_i32 : i32, i32
  }
}

</mosaic_0001>

<bundles_post_ra>
// kernel: tpu_custom_call.1
= control target key start
LH: loop header
LB: loop body
LE: loop exit
PB: predicated region body
PF: predicated region fallthrough
CT: control target
= control target key end

     0   :  { %9 = vsyncpa [#allocation3], 0  ;;  %s415_s0 = inlined_call_operand.vmem [shape: bf16[32,64], index: 0, kind: input, shape index: {}]   ;;  %s416_s1 = inlined_call_operand.hbm [shape: bf16[64,192], index: 1, kind: input, shape index: {}]   ;;  %s417_s2 = inlined_call_operand.vmem [shape: f32[1,192], index: 2, kind: input, shape index: {}]   ;;  %s418_s3 = inlined_call_operand.vmem [shape: f32[32,1], index: 3, kind: input, shape index: {}]   ;;  %s419_s4 = inlined_call_operand.hbm [shape: bf16[32,192], index: 4, kind: output, shape index: {}]  }
   0x1   :  { %10 = vsyncpa [#allocation4], 0  ;;  %s340_s15 = smov [#allocation2]  }
   0x2   :  { %s18_s16 = sshll.u32 %s340_s15, 4  ;;  %s19_s16 = int_to_ptr.vmem [resolvable:$true] %s18_s16 }
   0x3   :  { %s304_s17 = scalar_lea.vmem %s19_s16, 1024  ;;  %p309_p1 = scmp.lt.s32.totalorder %s19_s16, %s19_s16 }
   0x4   :  { %p305_p0 = scmp.ne.s32.totalorder %s19_s16, %s304_s17  ;;  %p310_p2 = scmp.lt.s32.totalorder %s304_s17, %s304_s17 }
   0x6   :  { %p311_p3 = por %p310_p2, %p309_p1 }
   0x8   :  { %p312_p4 = pnand %p311_p3, %p305_p0 }
   0xa   :  { %315 = shalt.err (!%p312_p4)
}
   0xb   :  { %s341_s18 = smov 128   ;;  %s342_s19 = smov 8  }
   0xc   :  { %24 = dma.hbm_to_vmem [thread:$0]  %s416_s1, 1024, %s19_s16, [#allocation3], %s341_s18, %s341_s18, %s342_s19  }
   0xd   :  { %336 = dma.done.wait [#allocation3], 1024  }
   0xe   :  { %337 = vsyncadd [#allocation3], 4294966272  ;;  %v343_v0 = vmov 0   ;;  %v282_v1 = vld [vmem:[#allocation2 + $0x34] ss:$8 sps:$4 sm:$0xff]   ;;  %v167_v8 = vld [vmem:[%s418_s3] sm:$0xff]  ;;  %v47_v15 = vlaneseq }
   0xf   :  { %146 = vmatprep.mubr.bf16.mxu0 %v343_v0  ;;  %156 = vmatprep.mubr.bf16.mxu1 %v343_v0  ;;  %v284_v2 = vld [vmem:[#allocation2 + $0x30] ss:$8 sps:$4 sm:$0xff]   ;;  %v285_v3 = vld [vmem:[#allocation2 + $0x24] ss:$8 sps:$4 sm:$0xff]   ;;  %v287_v4 = vld [vmem:[#allocation2 + $0x20] ss:$8 sps:$4 sm:$0xff]  }
  0x10   :  { %281 = vset.pattern.permute.xlu1 %v343_v0  ;;  %280 = vset.pattern.permute.xlu0 %v343_v0  ;;  %v288_v5 = vld [vmem:[#allocation2 + $0x14] ss:$8 sps:$4 sm:$0xff]   ;;  %v290_v6 = vld [vmem:[#allocation2 + $0x10] ss:$8 sps:$4 sm:$0xff]   ;;  %v291_v9 = vld [vmem:[#allocation2 + $0x4] ss:$8 sps:$4 sm:$0xff]  }
  0x11   :  { %122 = vmatprep.subr.bf16.mxu0 %v282_v1  ;;  %267 = vmatprep.subr.bf16.mxu1 %v282_v1  ;;  %v169_v7 = vld [vmem:[%s418_s3 + $0x10] sm:$0xff]  ;;  %v170_v10 = vld [vmem:[%s418_s3 + $0x18] sm:$0xff]  ;;  %v168_v11 = vld [vmem:[%s418_s3 + $0x8] sm:$0xff]  ;;  %vm107_vm0 = vcmask 523264   ;;  %v48_v16 = vshrl.u32 %v47_v15, 7  ;;  %vm223_vm1 = vcmask 1043456  }
  0x12   :  { %123 = vmatpush1.bf16.msra.mxu0 %v284_v2  ;;  %271 = vmatpush1.bf16.msra.mxu1 %v284_v2  ;;  %v293_v12 = vld [vmem:[#allocation2] ss:$8 sps:$4 sm:$0xff]   ;;  %vm224_vm2 = vcmask 523268  }
  0x13   :  { %124 = vmatprep.subr.bf16.mxu0 %v285_v3  ;;  %268 = vmatprep.subr.bf16.mxu1 %v285_v3  ;;  %v294_v13 = vld [vmem:[%s415_s0] sm:$0xff]   ;;  %v295_v14 = vld [vmem:[%s415_s0 + $0x8] sm:$0xff]   ;;  %v49_v17 = vsub.s32 0, %v48_v16  ;;  %v53_v19 = vsub.s32 1, %v48_v16  ;;  %vm397_vm3 = vmor %vm224_vm2, %vm223_vm1  ;;  %s344_s0 = smov [#allocation5]  }
  0x14   :  { %183 = vperm.xlu1 %281, %v169_v7   ;;  %173 = vperm.xlu0 %280, %v167_v8   ;;  %v45_v18 = vld [vmem:[%s417_s2] sm:$0x3]  ;;  %s235_s2 = sshll.u32 %s344_s0, 4  ;;  %s236_s2 = int_to_ptr.vmem [resolvable:$true] %s235_s2 }
  0x15   :  { %v50_v20 = vrot.slane %v45_v18, %v49_v17  ;;  %v54_v21 = vrot.slane %v45_v18, %v53_v19  ;;  %s316_s8 = scalar_lea.vmem %s236_s2, 512  ;;  %p321_p6 = scmp.lt.s32.totalorder %s236_s2, %s236_s2 }
  0x16   :  { %125 = vmatpush1.bf16.msra.mxu0 %v287_v4  ;;  %272 = vmatpush1.bf16.msra.mxu1 %v287_v4  ;;  %p317_p5 = scmp.ne.s32.totalorder %s236_s2, %s316_s8  ;;  %p322_p7 = scmp.lt.s32.totalorder %s316_s8, %s316_s8 }
  0x17   :  { %126 = vmatprep.subr.bf16.mxu0 %v288_v5  ;;  %269 = vmatprep.subr.bf16.mxu1 %v288_v5 }
  0x18   :  { %188 = vperm.xlu1 %281, %v170_v10   ;;  %178 = vperm.xlu0 %280, %v168_v11   ;;  %p323_p8 = por %p322_p7, %p321_p6 }
  0x1a   :  { %127 = vmatpush1.bf16.msra.mxu0 %v290_v6  ;;  %273 = vmatpush1.bf16.msra.mxu1 %v290_v6  ;;  %p324_p9 = pnand %p323_p8, %p317_p5 }
  0x1b   :  { %128 = vmatprep.subr.bf16.mxu0 %v291_v9  ;;  %270 = vmatprep.subr.bf16.mxu1 %v291_v9 }
  0x1e   :  { %129 = vmatpush1.bf16.msra.mxu0 %v293_v12  ;;  %274 = vmatpush1.bf16.msra.mxu1 %v293_v12 }
  0x21   :  { %257 = vmatmul.mubr.msk.bf16.vlgmr.msra.gmra.mxu0 %vm107_vm0, %v294_v13  ;;  %258 = vmatmul.mubr.msk.bf16.vlgmr.msra.gmra.mxu1 %vm107_vm0, %v295_v14 }
  0x8f   :  { %v184_v28 = vpop.permute.xlu1 %183  ;;  %v174_v29 = vpop.permute.xlu0 %173 }
  0x93   :  { %v189_v47 = vpop.permute.xlu1 %188  ;;  %v179_v48 = vpop.permute.xlu0 %178 }
  0xe1   :  { %v148_v22 = vpop.f32.mrf.mxu0  ;;  %v158_v23 = vpop.f32.mrf.mxu1 }
  0xe2   :  { %v149_v24 = vadd.f32 %v148_v22, %v50_v20  ;;  %v159_v25 = vadd.f32 %v158_v23, %v50_v20 }
  0xe3   :  { %v150_v26 = vpop.f32.mrf.mxu0  ;;  %v160_v27 = vpop.f32.mrf.mxu1 }
  0xe4   :  { %v151_v30 = vadd.f32 %v150_v26, %v54_v21  ;;  %v161_v31 = vadd.f32 %v160_v27, %v54_v21  ;;  %v191_v34 = vmul.f32 %v174_v29, %v149_v24  ;;  %v195_v35 = vmul.f32 %v184_v28, %v159_v25 }
  0xe5   :  { %v152_v32 = vpop.f32.mrf.mxu0  ;;  %v162_v33 = vpop.f32.mrf.mxu1 }
  0xe6   :  { %v192_v36 = vmul.f32 %v174_v29, %v151_v30  ;;  %v196_v37 = vmul.f32 %v184_v28, %v161_v31  ;;  %v153_v38 = vadd.f32 %v152_v32, %v50_v20  ;;  %v163_v39 = vadd.f32 %v162_v33, %v50_v20 }
  0xe7   :  { %v154_v40 = vpop.f32.mrf.mxu0  ;;  %v164_v41 = vpop.f32.mrf.mxu1 }
  0xe8   :  { %v263_v43 = vpack.c.bf16 %v192_v36, %v191_v34  ;;  %v265_v44 = vpack.c.bf16 %v196_v37, %v195_v35  ;;  %v155_v45 = vadd.f32 %v154_v40, %v54_v21  ;;  %v165_v46 = vadd.f32 %v164_v41, %v54_v21 }
  0xe9   :  { %v193_v49 = vmul.f32 %v179_v48, %v153_v38  ;;  %v197_v50 = vmul.f32 %v189_v47, %v163_v39 }
  0xea   :  { %226 = vst.msk [vmem:[#allocation5] sm:$0xff] %vm397_vm3, %v263_v43  ;;  %228 = vst.msk [vmem:[#allocation5 + $0x10] sm:$0xff] %vm397_vm3, %v265_v44  ;;  %v194_v51 = vmul.f32 %v179_v48, %v155_v45  ;;  %v198_v52 = vmul.f32 %v189_v47, %v165_v46 }
  0xec   :  { %v264_v53 = vpack.c.bf16 %v194_v51, %v193_v49  ;;  %v266_v54 = vpack.c.bf16 %v198_v52, %v197_v50 }
  0xee   :  { %227 = vst.msk [vmem:[#allocation5 + $0x8] sm:$0xff] %vm397_vm3, %v264_v53  ;;  %229 = vst.msk [vmem:[#allocation5 + $0x18] sm:$0xff] %vm397_vm3, %v266_v54 }
  0xef   :  { %327 = shalt.err (!%p324_p9)
}
  0xf0   :  { %241 = dma.vmem_to_hbm [thread:$0]  %s236_s2, 512, %s419_s4, [#allocation4], %s341_s18, %s341_s18, %s342_s19  }
  0xf1   :  { %338 = dma.done.wait [#allocation4], 512  }
  0xf2   :  { %339 = vsyncadd [#allocation4], 4294966784 }
  0xf3   :  { %245 = vsyncpa [#allocation3], 1 }
  0xf4   :  { %246 = vsyncpa [#allocation4], 1 }

</bundles_post_ra>
